<compile_context>
chip_gen: v6e
topology: v6e:2x2x1
jax: 0.10.0
libtpu: 0.0.40
codegen_flags: <defaults>
</compile_context>

<pallas_src>
import functools

import jax
import jax.numpy as jnp
import numpy as np
from jax.experimental import pallas as pl
from jax.experimental.pallas import tpu as pltpu


def fire_kernel(x_ref, ws_ref, bs_ref, we1_ref, be1_ref, we3_ref, be3_ref,
                out_ref, *, W, pad, split_dy):
    # Shapes (spatial flattened onto the 128-wide lane axis, P = H*W):
    #   x_ref   : (B_tile, Cin, P)
    #   ws_ref  : (Cs,  Cin)        squeeze 1x1 weights (out, in)   [dot dtype]
    #   bs_ref  : (Cs,  1)          f32
    #   we1_ref : (Ce1, Cs)         expand 1x1 weights (out, in)    [dot dtype]
    #   be1_ref : (Ce1, 1)          f32
    #   we3_ref : (Ce3, 9*Cs)  or (3, Ce3, 3*Cs) when split_dy      [dot dtype]
    #   be3_ref : (Ce3, 1)          f32
    #   out_ref : (B_tile, Ce1+Ce3, P)   rows [:Ce1] = e1, rows [Ce1:] = e3
    B_tile, _, P = x_ref.shape
    Cs = ws_ref.shape[0]
    Ce1 = we1_ref.shape[0]
    Ce3 = out_ref.shape[1] - Ce1
    dot_dt = we1_ref.dtype            # bf16 (default) or f32; set by wrapper.

    # Hoisted, loop-invariant values (weights, biases, edge masks, zero pad).
    ws = ws_ref[...]
    bs = bs_ref[...]
    we1 = we1_ref[...]
    be1 = be1_ref[...]
    we3 = we3_ref[...]
    be3 = be3_ref[...]

    # Column-validity masks for the dx = -1 / +1 taps, built in-kernel (VPU,
    # hides under MXU/DMA slack; saves an input buffer).  All mask math in f32.
    col = jax.lax.broadcasted_iota(jnp.int32, (1, P), 1) % W
    left_ok = (col >= 1).astype(jnp.float32)       # w-1 >= 0
    right_ok = (col <= W - 2).astype(jnp.float32)  # w+1 <  W

    zpad = jnp.zeros((Cs, pad), jnp.float32)

    def one_image(i, carry):
        x = x_ref[i]                                               # (Cin, P)

        # squeeze 1x1 conv + ReLU (MXU, f32 accumulate; bf16 operands only at
        # the dot boundary, elementwise stays f32).
        s = jnp.dot(ws, x.astype(dot_dt), preferred_element_type=jnp.float32)
        s = jnp.maximum(s + bs, 0.0)                               # (Cs, P) f32

        # expand 1x1 conv + ReLU -> stored straight into the fused output
        # (lane-dense, sublane offset 0).
        e1 = jnp.dot(we1, s.astype(dot_dt), preferred_element_type=jnp.float32)
        out_ref[i, 0:Ce1, :] = jnp.maximum(e1 + be1, 0.0).astype(out_ref.dtype)

        # expand 3x3 conv (padding=1): zero-pad the flattened spatial axis,
        # take shifted windows (static slices), zero columns that crossed a
        # row edge, stack along the contraction axis and hit the MXU.
        spad = jnp.concatenate([zpad, s, zpad], axis=1)            # (Cs, P+2*pad)

        def taps_for(dys):
            taps = []
            for dy in dys:
                for dx in (-1, 0, 1):
                    if dy == 0 and dx == 0:
                        taps.append(s)                 # center tap is just s
                        continue
                    off = dy * W + dx
                    t = spad[:, pad + off:pad + off + P]           # (Cs, P)
                    if dx == -1:
                        t = t * left_ok
                    elif dx == 1:
                        t = t * right_ok
                    taps.append(t)
            return jnp.concatenate(taps, axis=0)       # (len(dys)*3*Cs, P)

        if split_dy:
            # Production channel counts: three K=3*Cs matmuls grouped by ky,
            # accumulated in f32 (3x smaller transient tap slab).
            e3 = jnp.zeros((Ce3, P), jnp.float32)
            for k_idx in range(3):                     # ky = -1, 0, +1
                lhs = taps_for((k_idx - 1,))
                e3 = e3 + jnp.dot(we3[k_idx], lhs.astype(dot_dt),
                                  preferred_element_type=jnp.float32)
        else:
            # Small Cs (9*Cs <= 128): single fat-K matmul.
            lhs = taps_for((-1, 0, 1))                 # (9*Cs, P)
            e3 = jnp.dot(we3, lhs.astype(dot_dt),
                         preferred_element_type=jnp.float32)

        out_ref[i, Ce1:Ce1 + Ce3, :] = jnp.maximum(e3 + be3, 0.0).astype(out_ref.dtype)
        return carry

    jax.lax.fori_loop(0, B_tile, one_image, 0, unroll=True)


def fire_forward(x_nchw, ws, bs, we1, be1, we3, be3, *,
                 dot_dtype=jnp.bfloat16, batch_tile=8):
    """Pallas Fire forward.

    x_nchw: (B, Cin, H, W)
    ws : (Cin, Cs)          bs : (1, Cs)     squeeze 1x1
    we1: (Cs, Ce1)          be1: (1, Ce1)    expand 1x1
    we3: (3, 3, Cs, Ce3) HWIO                expand 3x3 (padding=1)
    be3: (1, Ce3)
    dot_dtype: MXU operand dtype (bf16 default; elementwise math stays f32).
    returns (B, Ce1 + Ce3, H, W)
    """
    B, Cin, H, W = x_nchw.shape
    Cs = ws.shape[1]
    Ce1 = we1.shape[1]
    Ce3 = we3.shape[3]
    P = H * W
    out_dtype = x_nchw.dtype

    # Flatten spatial onto the lane axis; NCHW needs no transpose in this layout.
    x = x_nchw.reshape(B, Cin, P)

    # Static choice of 3x3 contraction strategy (see kernel).
    split_dy = (9 * Cs > 128)

    # Weights in (out, K) form, cast to the MXU operand dtype in the wrapper
    # (tiny arrays; also halves their HBM/VMEM footprint when bf16).
    ws_t = jnp.transpose(ws).astype(dot_dtype)                     # (Cs, Cin)
    we1_t = jnp.transpose(we1).astype(dot_dtype)                   # (Ce1, Cs)
    if split_dy:
        # (3,3,Cs,Ce3) -> (3, Ce3, 3*Cs); per-ky K order = (kx, c)
        we3_t = jnp.transpose(we3.reshape(3, 3 * Cs, Ce3), (0, 2, 1)).astype(dot_dtype)
    else:
        # (3,3,Cs,Ce3) -> (Ce3, 9*Cs); K order = (ky, kx, c)
        we3_t = jnp.transpose(we3.reshape(9 * Cs, Ce3)).astype(dot_dtype)
    bs_t = jnp.transpose(bs).astype(jnp.float32)                   # (Cs, 1)
    be1_t = jnp.transpose(be1).astype(jnp.float32)                 # (Ce1, 1)
    be3_t = jnp.transpose(be3).astype(jnp.float32)                 # (Ce3, 1)

    # Zero padding of the flattened spatial axis; must cover the largest shift
    # (W+1).  Rounded to 128 lanes so building spad is two aligned placements.
    pad = 128 * pl.cdiv(W + 1, 128)

    # Batch blocking: largest divisor of B not exceeding `batch_tile`.
    bt = max(d for d in range(1, min(B, batch_tile) + 1) if B % d == 0)

    kernel = functools.partial(fire_kernel, W=W, pad=pad, split_dy=split_dy)

    weight_bytes = sum(int(a.size) * a.dtype.itemsize
                       for a in (ws_t, bs_t, we1_t, be1_t, we3_t, be3_t))
    cost = pl.CostEstimate(
        flops=2 * (Cin * Cs + Cs * Ce1 + 9 * Cs * Ce3) * B * P,
        transcendentals=0,
        bytes_accessed=int(x.size) * x.dtype.itemsize
                       + weight_bytes
                       + B * (Ce1 + Ce3) * P * jnp.dtype(out_dtype).itemsize)

    if split_dy:
        we3_spec = pl.BlockSpec(we3_t.shape, lambda b: (0, 0, 0))
    else:
        we3_spec = pl.BlockSpec(we3_t.shape, lambda b: (0, 0))

    # NOTE: on v7x at large channel counts, pipeline_mode=pl.Buffered(1) on the
    # constant-index weight/bias specs halves their VMEM (they never change).
    out = pl.pallas_call(
        kernel,
        out_shape=jax.ShapeDtypeStruct((B, Ce1 + Ce3, P), out_dtype),
        grid_spec=pltpu.PrefetchScalarGridSpec(
            num_scalar_prefetch=0,
            grid=(B // bt,),
            in_specs=[
                pl.BlockSpec((bt, Cin, P), lambda b: (b, 0, 0)),
                pl.BlockSpec(ws_t.shape, lambda b: (0, 0)),
                pl.BlockSpec(bs_t.shape, lambda b: (0, 0)),
                pl.BlockSpec(we1_t.shape, lambda b: (0, 0)),
                pl.BlockSpec(be1_t.shape, lambda b: (0, 0)),
                we3_spec,
                pl.BlockSpec(be3_t.shape, lambda b: (0, 0)),
            ],
            out_specs=pl.BlockSpec((bt, Ce1 + Ce3, P), lambda b: (b, 0, 0)),
        ),
        compiler_params=pltpu.CompilerParams(
            dimension_semantics=("parallel",)),
        cost_estimate=cost,
    )(x, ws_t, bs_t, we1_t, be1_t, we3_t, be3_t)

    # Single fused output: just un-flatten spatial (no concat, no transpose).
    return out.reshape(B, Ce1 + Ce3, H, W)


def fire_reference(x_nchw, ws, bs, we1, be1, we3, be3):
    """Pure-JAX reference (matches PyTorch Fire.forward semantics)."""
    x = jnp.transpose(x_nchw, (0, 2, 3, 1))
    s = jax.nn.relu(jnp.einsum('bhwc,cs->bhws', x, ws) + bs[0])
    e1 = jax.nn.relu(jnp.einsum('bhws,se->bhwe', s, we1) + be1[0])
    e3 = jax.lax.conv_general_dilated(
        s, we3, window_strides=(1, 1), padding='SAME',
        dimension_numbers=('NHWC', 'HWIO', 'NHWC'))
    e3 = jax.nn.relu(e3 + be3[0])
    out = jnp.concatenate([e1, e3], axis=-1)
    return jnp.transpose(out, (0, 3, 1, 2))


if __name__ == "__main__":
    # Fire(inplanes=4, squeeze_planes=8, expand1x1_planes=16, expand3x3_planes=16);
    # input is NCHW like the PyTorch module.
    B, Cin, H, W = 2, 4, 16, 16
    Cs, Ce1, Ce3 = 8, 16, 16

    key = jax.random.PRNGKey(0)
    kx, k1, k2, k3, k4, k5, k6 = jax.random.split(key, 7)

    x = jax.random.normal(kx, (B, Cin, H, W), dtype=jnp.float32)

    # Synthetic parameters in kernel-friendly layouts:
    #   squeeze 1x1: (Cin, Cs); expand1x1: (Cs, Ce1); expand3x3: HWIO (3,3,Cs,Ce3)
    ws = jax.random.normal(k1, (Cin, Cs), dtype=jnp.float32) * 0.2
    bs = jax.random.normal(k2, (1, Cs), dtype=jnp.float32) * 0.1
    we1 = jax.random.normal(k3, (Cs, Ce1), dtype=jnp.float32) * 0.2
    be1 = jax.random.normal(k4, (1, Ce1), dtype=jnp.float32) * 0.1
    we3 = jax.random.normal(k5, (3, 3, Cs, Ce3), dtype=jnp.float32) * 0.2
    be3 = jax.random.normal(k6, (1, Ce3), dtype=jnp.float32) * 0.1

    ref = jax.block_until_ready(fire_reference(x, ws, bs, we1, be1, we3, be3))

    # f32 MXU-operand path: exact check.
    out_f32 = jax.block_until_ready(
        fire_forward(x, ws, bs, we1, be1, we3, be3, dot_dtype=jnp.float32))
    assert out_f32.shape == (B, Ce1 + Ce3, H, W), out_f32.shape
    np.testing.assert_allclose(np.asarray(out_f32), np.asarray(ref),
                               rtol=1e-4, atol=1e-4)

    # Default bf16 MXU-operand path (the fast path on v6e/v7x): loose tolerance.
    out_bf16 = jax.block_until_ready(
        fire_forward(x, ws, bs, we1, be1, we3, be3))
    assert out_bf16.shape == (B, Ce1 + Ce3, H, W), out_bf16.shape
    np.testing.assert_allclose(np.asarray(out_bf16), np.asarray(ref),
                               rtol=3e-2, atol=3e-2)

    print("KERNEL_OK")
</pallas_src>

<mosaic_0001>
module attributes {stable_mosaic.version = 11 : i64} {
  func.func @fire_kernel(%arg0: i32, %arg1: memref<2x4x256xf32, #tpu.memory_space<vmem>>, %arg2: memref<8x4xf32, #tpu.memory_space<vmem>>, %arg3: memref<8x1xf32, #tpu.memory_space<vmem>>, %arg4: memref<16x8xf32, #tpu.memory_space<vmem>>, %arg5: memref<16x1xf32, #tpu.memory_space<vmem>>, %arg6: memref<16x72xf32, #tpu.memory_space<vmem>>, %arg7: memref<16x1xf32, #tpu.memory_space<vmem>>, %arg8: memref<2x32x256xf32, #tpu.memory_space<vmem>>) attributes {dimension_semantics = [#tpu.dimension_semantics<parallel>], iteration_bounds = array<i64: 1>, scalar_prefetch = 0 : i64, scratch_operands = 0 : i64, tpu.core_type = #tpu.core_type<tc>, window_params = [{transform_indices = @transform_0, window_bounds = array<i64: 2, 4, 256>}, {pipeline_mode = #tpu.pipeline_mode<synchronous>, transform_indices = @transform_1, window_bounds = array<i64: 8, 4>}, {pipeline_mode = #tpu.pipeline_mode<synchronous>, transform_indices = @transform_2, window_bounds = array<i64: 8, 1>}, {pipeline_mode = #tpu.pipeline_mode<synchronous>, transform_indices = @transform_3, window_bounds = array<i64: 16, 8>}, {pipeline_mode = #tpu.pipeline_mode<synchronous>, transform_indices = @transform_4, window_bounds = array<i64: 16, 1>}, {pipeline_mode = #tpu.pipeline_mode<synchronous>, transform_indices = @transform_5, window_bounds = array<i64: 16, 72>}, {pipeline_mode = #tpu.pipeline_mode<synchronous>, transform_indices = @transform_6, window_bounds = array<i64: 16, 1>}, {transform_indices = @transform_7, window_bounds = array<i64: 2, 32, 256>}]} {
    %c0 = arith.constant 0 : index
    %c0_0 = arith.constant 0 : index
    %0 = vector.load %arg2[%c0, %c0_0] : memref<8x4xf32, #tpu.memory_space<vmem>>, vector<8x4xf32>
    %c0_1 = arith.constant 0 : index
    %c0_2 = arith.constant 0 : index
    %1 = vector.load %arg3[%c0_1, %c0_2] : memref<8x1xf32, #tpu.memory_space<vmem>>, vector<8x1xf32>
    %c0_3 = arith.constant 0 : index
    %c0_4 = arith.constant 0 : index
    %2 = vector.load %arg4[%c0_3, %c0_4] : memref<16x8xf32, #tpu.memory_space<vmem>>, vector<16x8xf32>
    %c0_5 = arith.constant 0 : index
    %c0_6 = arith.constant 0 : index
    %3 = vector.load %arg5[%c0_5, %c0_6] : memref<16x1xf32, #tpu.memory_space<vmem>>, vector<16x1xf32>
    %c0_7 = arith.constant 0 : index
    %c0_8 = arith.constant 0 : index
    %4 = vector.load %arg6[%c0_7, %c0_8] : memref<16x72xf32, #tpu.memory_space<vmem>>, vector<16x72xf32>
    %c0_9 = arith.constant 0 : index
    %c0_10 = arith.constant 0 : index
    %5 = vector.load %arg7[%c0_9, %c0_10] : memref<16x1xf32, #tpu.memory_space<vmem>>, vector<16x1xf32>
    %6 = tpu.iota {dimensions = array<i32: 1>} : vector<1x256xi32>
    %c16_i32 = arith.constant 16 : i32
    %c0_i32 = arith.constant 0 : i32
    %7 = arith.cmpi eq, %c16_i32, %c0_i32 : i32
    %c1_i32 = arith.constant 1 : i32
    %8 = arith.select %7, %c1_i32, %c16_i32 : i32
    %9 = vector.broadcast %8 : i32 to vector<1x256xi32>
    %10 = arith.remsi %6, %9 : vector<1x256xi32>
    %c0_i32_11 = arith.constant 0 : i32
    %11 = vector.broadcast %c0_i32_11 : i32 to vector<1x256xi32>
    %12 = arith.cmpi ne, %10, %11 : vector<1x256xi32>
    %c0_i32_12 = arith.constant 0 : i32
    %13 = vector.broadcast %c0_i32_12 : i32 to vector<1x256xi32>
    %14 = arith.cmpi slt, %10, %13 : vector<1x256xi32>
    %c0_i32_13 = arith.constant 0 : i32
    %15 = arith.cmpi slt, %8, %c0_i32_13 : i32
    %16 = vector.broadcast %15 : i1 to vector<1x256xi1>
    %17 = vector.broadcast %16 : vector<1x256xi1> to vector<1x256xi1>
    %18 = arith.xori %14, %17 : vector<1x256xi1>
    %19 = arith.andi %18, %12 : vector<1x256xi1>
    %20 = vector.broadcast %8 : i32 to vector<1x256xi32>
    %21 = arith.addi %10, %20 : vector<1x256xi32>
    %22 = arith.select %19, %21, %10 : vector<1x256xi1>, vector<1x256xi32>
    %c1_i32_14 = arith.constant 1 : i32
    %23 = vector.broadcast %c1_i32_14 : i32 to vector<1x256xi32>
    %24 = arith.cmpi sge, %22, %23 : vector<1x256xi32>
    %25 = arith.extui %24 : vector<1x256xi1> to vector<1x256xi32>
    %26 = arith.sitofp %25 : vector<1x256xi32> to vector<1x256xf32>
    %c14_i32 = arith.constant 14 : i32
    %27 = vector.broadcast %c14_i32 : i32 to vector<1x256xi32>
    %28 = arith.cmpi sle, %22, %27 : vector<1x256xi32>
    %29 = arith.extui %28 : vector<1x256xi1> to vector<1x256xi32>
    %30 = arith.sitofp %29 : vector<1x256xi32> to vector<1x256xf32>
    %cst = arith.constant 0.000000e+00 : f32
    %31 = vector.broadcast %cst : f32 to vector<8x128xf32>
    %c0_i32_15 = arith.constant 0 : i32
    %32 = arith.index_cast %c0_i32_15 : i32 to index
    %c0_16 = arith.constant 0 : index
    %c0_17 = arith.constant 0 : index
    %33 = vector.load %arg1[%32, %c0_16, %c0_17] : memref<2x4x256xf32, #tpu.memory_space<vmem>>, vector<1x4x256xf32>
    %34 = vector.shape_cast %33 : vector<1x4x256xf32> to vector<4x256xf32>
    %cst_18 = arith.constant dense<0.000000e+00> : vector<8x256xf32>
    %35 = tpu.matmul %0, %34, %cst_18 {dimension_numbers = #tpu.dot_dimension_numbers<[1], [0], [0], [1], [0, 0, 1, 1], [], []>} : vector<8x4xf32>, vector<4x256xf32>, vector<8x256xf32> -> vector<8x256xf32>
    %36 = vector.broadcast %1 : vector<8x1xf32> to vector<8x256xf32>
    %37 = arith.addf %35, %36 : vector<8x256xf32>
    %cst_19 = arith.constant 0.000000e+00 : f32
    %38 = vector.broadcast %cst_19 : f32 to vector<8x256xf32>
    %39 = arith.maximumf %37, %38 : vector<8x256xf32>
    %cst_20 = arith.constant dense<0.000000e+00> : vector<16x256xf32>
    %40 = tpu.matmul %2, %39, %cst_20 {dimension_numbers = #tpu.dot_dimension_numbers<[1], [0], [0], [1], [0, 0, 1, 1], [], []>} : vector<16x8xf32>, vector<8x256xf32>, vector<16x256xf32> -> vector<16x256xf32>
    %41 = vector.broadcast %3 : vector<16x1xf32> to vector<16x256xf32>
    %42 = arith.addf %40, %41 : vector<16x256xf32>
    %cst_21 = arith.constant 0.000000e+00 : f32
    %43 = vector.broadcast %cst_21 : f32 to vector<16x256xf32>
    %44 = arith.maximumf %42, %43 : vector<16x256xf32>
    %45 = arith.index_cast %c0_i32_15 : i32 to index
    %c0_22 = arith.constant 0 : index
    %c0_23 = arith.constant 0 : index
    %46 = vector.load %arg8[%45, %c0_22, %c0_23] : memref<2x32x256xf32, #tpu.memory_space<vmem>>, vector<1x16x256xf32>
    %47 = vector.shape_cast %46 : vector<1x16x256xf32> to vector<16x256xf32>
    %48 = vector.shape_cast %44 : vector<16x256xf32> to vector<1x16x256xf32>
    tpu.vector_store %arg8[%45, %c0_22, %c0_23], %48 {strides = array<i32>} : memref<2x32x256xf32, #tpu.memory_space<vmem>>, vector<1x16x256xf32>,
    %49 = tpu.concatenate %31, %39, %31 in 1 : vector<8x128xf32>, vector<8x256xf32>, vector<8x128xf32> -> vector<8x512xf32>
    %50 = vector.extract_strided_slice %49 {offsets = [0, 111], sizes = [8, 256], strides = [1, 1]} : vector<8x512xf32> to vector<8x256xf32>
    %51 = vector.broadcast %26 : vector<1x256xf32> to vector<8x256xf32>
    %52 = arith.mulf %50, %51 : vector<8x256xf32>
    %53 = vector.extract_strided_slice %49 {offsets = [0, 112], sizes = [8, 256], strides = [1, 1]} : vector<8x512xf32> to vector<8x256xf32>
    %54 = vector.extract_strided_slice %49 {offsets = [0, 113], sizes = [8, 256], strides = [1, 1]} : vector<8x512xf32> to vector<8x256xf32>
    %55 = vector.broadcast %30 : vector<1x256xf32> to vector<8x256xf32>
    %56 = arith.mulf %54, %55 : vector<8x256xf32>
    %57 = vector.extract_strided_slice %49 {offsets = [0, 127], sizes = [8, 256], strides = [1, 1]} : vector<8x512xf32> to vector<8x256xf32>
    %58 = vector.broadcast %26 : vector<1x256xf32> to vector<8x256xf32>
    %59 = arith.mulf %57, %58 : vector<8x256xf32>
    %60 = vector.extract_strided_slice %49 {offsets = [0, 129], sizes = [8, 256], strides = [1, 1]} : vector<8x512xf32> to vector<8x256xf32>
    %61 = vector.broadcast %30 : vector<1x256xf32> to vector<8x256xf32>
    %62 = arith.mulf %60, %61 : vector<8x256xf32>
    %63 = vector.extract_strided_slice %49 {offsets = [0, 143], sizes = [8, 256], strides = [1, 1]} : vector<8x512xf32> to vector<8x256xf32>
    %64 = vector.broadcast %26 : vector<1x256xf32> to vector<8x256xf32>
    %65 = arith.mulf %63, %64 : vector<8x256xf32>
    %66 = vector.extract_strided_slice %49 {offsets = [0, 144], sizes = [8, 256], strides = [1, 1]} : vector<8x512xf32> to vector<8x256xf32>
    %67 = vector.extract_strided_slice %49 {offsets = [0, 145], sizes = [8, 256], strides = [1, 1]} : vector<8x512xf32> to vector<8x256xf32>
    %68 = vector.broadcast %30 : vector<1x256xf32> to vector<8x256xf32>
    %69 = arith.mulf %67, %68 : vector<8x256xf32>
    %70 = tpu.concatenate %52, %53, %56, %59, %39, %62, %65, %66, %69 in 0 : vector<8x256xf32>, vector<8x256xf32>, vector<8x256xf32>, vector<8x256xf32>, vector<8x256xf32>, vector<8x256xf32>, vector<8x256xf32>, vector<8x256xf32>, vector<8x256xf32> -> vector<72x256xf32>
    %cst_24 = arith.constant dense<0.000000e+00> : vector<16x256xf32>
    %71 = tpu.matmul %4, %70, %cst_24 {dimension_numbers = #tpu.dot_dimension_numbers<[1], [0], [0], [1], [0, 0, 1, 1], [], []>} : vector<16x72xf32>, vector<72x256xf32>, vector<16x256xf32> -> vector<16x256xf32>
    %72 = vector.broadcast %5 : vector<16x1xf32> to vector<16x256xf32>
    %73 = arith.addf %71, %72 : vector<16x256xf32>
    %cst_25 = arith.constant 0.000000e+00 : f32
    %74 = vector.broadcast %cst_25 : f32 to vector<16x256xf32>
    %75 = arith.maximumf %73, %74 : vector<16x256xf32>
    %76 = arith.index_cast %c0_i32_15 : i32 to index
    %c16 = arith.constant 16 : index
    %c0_26 = arith.constant 0 : index
    %77 = vector.load %arg8[%76, %c16, %c0_26] : memref<2x32x256xf32, #tpu.memory_space<vmem>>, vector<1x16x256xf32>
    %78 = vector.shape_cast %77 : vector<1x16x256xf32> to vector<16x256xf32>
    %79 = vector.shape_cast %75 : vector<16x256xf32> to vector<1x16x256xf32>
    tpu.vector_store %arg8[%76, %c16, %c0_26], %79 {strides = array<i32>} : memref<2x32x256xf32, #tpu.memory_space<vmem>>, vector<1x16x256xf32>,
    %c1_i32_27 = arith.constant 1 : i32
    %80 = arith.index_cast %c1_i32_27 : i32 to index
    %c0_28 = arith.constant 0 : index
    %c0_29 = arith.constant 0 : index
    %81 = vector.load %arg1[%80, %c0_28, %c0_29] : memref<2x4x256xf32, #tpu.memory_space<vmem>>, vector<1x4x256xf32>
    %82 = vector.shape_cast %81 : vector<1x4x256xf32> to vector<4x256xf32>
    %cst_30 = arith.constant dense<0.000000e+00> : vector<8x256xf32>
    %83 = tpu.matmul %0, %82, %cst_30 {dimension_numbers = #tpu.dot_dimension_numbers<[1], [0], [0], [1], [0, 0, 1, 1], [], []>} : vector<8x4xf32>, vector<4x256xf32>, vector<8x256xf32> -> vector<8x256xf32>
    %84 = vector.broadcast %1 : vector<8x1xf32> to vector<8x256xf32>
    %85 = arith.addf %83, %84 : vector<8x256xf32>
    %cst_31 = arith.constant 0.000000e+00 : f32
    %86 = vector.broadcast %cst_31 : f32 to vector<8x256xf32>
    %87 = arith.maximumf %85, %86 : vector<8x256xf32>
    %cst_32 = arith.constant dense<0.000000e+00> : vector<16x256xf32>
    %88 = tpu.matmul %2, %87, %cst_32 {dimension_numbers = #tpu.dot_dimension_numbers<[1], [0], [0], [1], [0, 0, 1, 1], [], []>} : vector<16x8xf32>, vector<8x256xf32>, vector<16x256xf32> -> vector<16x256xf32>
    %89 = vector.broadcast %3 : vector<16x1xf32> to vector<16x256xf32>
    %90 = arith.addf %88, %89 : vector<16x256xf32>
    %cst_33 = arith.constant 0.000000e+00 : f32
    %91 = vector.broadcast %cst_33 : f32 to vector<16x256xf32>
    %92 = arith.maximumf %90, %91 : vector<16x256xf32>
    %93 = arith.index_cast %c1_i32_27 : i32 to index
    %c0_34 = arith.constant 0 : index
    %c0_35 = arith.constant 0 : index
    %94 = vector.load %arg8[%93, %c0_34, %c0_35] : memref<2x32x256xf32, #tpu.memory_space<vmem>>, vector<1x16x256xf32>
    %95 = vector.shape_cast %94 : vector<1x16x256xf32> to vector<16x256xf32>
    %96 = vector.shape_cast %92 : vector<16x256xf32> to vector<1x16x256xf32>
    tpu.vector_store %arg8[%93, %c0_34, %c0_35], %96 {strides = array<i32>} : memref<2x32x256xf32, #tpu.memory_space<vmem>>, vector<1x16x256xf32>,
    %97 = tpu.concatenate %31, %87, %31 in 1 : vector<8x128xf32>, vector<8x256xf32>, vector<8x128xf32> -> vector<8x512xf32>
    %98 = vector.extract_strided_slice %97 {offsets = [0, 111], sizes = [8, 256], strides = [1, 1]} : vector<8x512xf32> to vector<8x256xf32>
    %99 = vector.broadcast %26 : vector<1x256xf32> to vector<8x256xf32>
    %100 = arith.mulf %98, %99 : vector<8x256xf32>
    %101 = vector.extract_strided_slice %97 {offsets = [0, 112], sizes = [8, 256], strides = [1, 1]} : vector<8x512xf32> to vector<8x256xf32>
    %102 = vector.extract_strided_slice %97 {offsets = [0, 113], sizes = [8, 256], strides = [1, 1]} : vector<8x512xf32> to vector<8x256xf32>
    %103 = vector.broadcast %30 : vector<1x256xf32> to vector<8x256xf32>
    %104 = arith.mulf %102, %103 : vector<8x256xf32>
    %105 = vector.extract_strided_slice %97 {offsets = [0, 127], sizes = [8, 256], strides = [1, 1]} : vector<8x512xf32> to vector<8x256xf32>
    %106 = vector.broadcast %26 : vector<1x256xf32> to vector<8x256xf32>
    %107 = arith.mulf %105, %106 : vector<8x256xf32>
    %108 = vector.extract_strided_slice %97 {offsets = [0, 129], sizes = [8, 256], strides = [1, 1]} : vector<8x512xf32> to vector<8x256xf32>
    %109 = vector.broadcast %30 : vector<1x256xf32> to vector<8x256xf32>
    %110 = arith.mulf %108, %109 : vector<8x256xf32>
    %111 = vector.extract_strided_slice %97 {offsets = [0, 143], sizes = [8, 256], strides = [1, 1]} : vector<8x512xf32> to vector<8x256xf32>
    %112 = vector.broadcast %26 : vector<1x256xf32> to vector<8x256xf32>
    %113 = arith.mulf %111, %112 : vector<8x256xf32>
    %114 = vector.extract_strided_slice %97 {offsets = [0, 144], sizes = [8, 256], strides = [1, 1]} : vector<8x512xf32> to vector<8x256xf32>
    %115 = vector.extract_strided_slice %97 {offsets = [0, 145], sizes = [8, 256], strides = [1, 1]} : vector<8x512xf32> to vector<8x256xf32>
    %116 = vector.broadcast %30 : vector<1x256xf32> to vector<8x256xf32>
    %117 = arith.mulf %115, %116 : vector<8x256xf32>
    %118 = tpu.concatenate %100, %101, %104, %107, %87, %110, %113, %114, %117 in 0 : vector<8x256xf32>, vector<8x256xf32>, vector<8x256xf32>, vector<8x256xf32>, vector<8x256xf32>, vector<8x256xf32>, vector<8x256xf32>, vector<8x256xf32>, vector<8x256xf32> -> vector<72x256xf32>
    %cst_36 = arith.constant dense<0.000000e+00> : vector<16x256xf32>
    %119 = tpu.matmul %4, %118, %cst_36 {dimension_numbers = #tpu.dot_dimension_numbers<[1], [0], [0], [1], [0, 0, 1, 1], [], []>} : vector<16x72xf32>, vector<72x256xf32>, vector<16x256xf32> -> vector<16x256xf32>
    %120 = vector.broadcast %5 : vector<16x1xf32> to vector<16x256xf32>
    %121 = arith.addf %119, %120 : vector<16x256xf32>
    %cst_37 = arith.constant 0.000000e+00 : f32
    %122 = vector.broadcast %cst_37 : f32 to vector<16x256xf32>
    %123 = arith.maximumf %121, %122 : vector<16x256xf32>
    %124 = arith.index_cast %c1_i32_27 : i32 to index
    %c16_38 = arith.constant 16 : index
    %c0_39 = arith.constant 0 : index
    %125 = vector.load %arg8[%124, %c16_38, %c0_39] : memref<2x32x256xf32, #tpu.memory_space<vmem>>, vector<1x16x256xf32>
    %126 = vector.shape_cast %125 : vector<1x16x256xf32> to vector<16x256xf32>
    %127 = vector.shape_cast %123 : vector<16x256xf32> to vector<1x16x256xf32>
    tpu.vector_store %arg8[%124, %c16_38, %c0_39], %127 {strides = array<i32>} : memref<2x32x256xf32, #tpu.memory_space<vmem>>, vector<1x16x256xf32>,
    %c2_i32 = arith.constant 2 : i32
    return
  }
  func.func @transform_0(%arg0: i32) -> (i32, i32, i32) {
    %c0_i32 = arith.constant 0 : i32
    %c0_i32_0 = arith.constant 0 : i32
    %c0_i32_1 = arith.constant 0 : i32
    return %arg0, %c0_i32, %c0_i32_0 : i32, i32, i32
  }
  func.func @transform_1(%arg0: i32) -> (i32, i32) {
    %c0_i32 = arith.constant 0 : i32
    %c0_i32_0 = arith.constant 0 : i32
    %c0_i32_1 = arith.constant 0 : i32
    return %c0_i32, %c0_i32_0 : i32, i32
  }
  func.func @transform_2(%arg0: i32) -> (i32, i32) {
    %c0_i32 = arith.constant 0 : i32
    %c0_i32_0 = arith.constant 0 : i32
    %c0_i32_1 = arith.constant 0 : i32
    return %c0_i32, %c0_i32_0 : i32, i32
  }
  func.func @transform_3(%arg0: i32) -> (i32, i32) {
    %c0_i32 = arith.constant 0 : i32
    %c0_i32_0 = arith.constant 0 : i32
    %c0_i32_1 = arith.constant 0 : i32
    return %c0_i32, %c0_i32_0 : i32, i32
  }
  func.func @transform_4(%arg0: i32) -> (i32, i32) {
    %c0_i32 = arith.constant 0 : i32
    %c0_i32_0 = arith.constant 0 : i32
    %c0_i32_1 = arith.constant 0 : i32
    return %c0_i32, %c0_i32_0 : i32, i32
  }
  func.func @transform_5(%arg0: i32) -> (i32, i32) {
    %c0_i32 = arith.constant 0 : i32
    %c0_i32_0 = arith.constant 0 : i32
    %c0_i32_1 = arith.constant 0 : i32
    return %c0_i32, %c0_i32_0 : i32, i32
  }
  func.func @transform_6(%arg0: i32) -> (i32, i32) {
    %c0_i32 = arith.constant 0 : i32
    %c0_i32_0 = arith.constant 0 : i32
    %c0_i32_1 = arith.constant 0 : i32
    return %c0_i32, %c0_i32_0 : i32, i32
  }
  func.func @transform_7(%arg0: i32) -> (i32, i32, i32) {
    %c0_i32 = arith.constant 0 : i32
    %c0_i32_0 = arith.constant 0 : i32
    %c0_i32_1 = arith.constant 0 : i32
    return %arg0, %c0_i32, %c0_i32_0 : i32, i32, i32
  }
}

</mosaic_0001>

<bundles_post_ra>
// kernel: tpu_custom_call.1
= control target key start
LH: loop header
LB: loop body
LE: loop exit
PB: predicated region body
PF: predicated region fallthrough
CT: control target
= control target key end

     0   :  { %vm88_vm0 = vcmask 1043456   ;;  %v37_v2 = vlaneseq  ;;  %v1145_v5 = vmov 0.0   ;;  %s1641_s0 = inlined_call_operand.vmem [shape: f32[2,4,256], index: 0, kind: input, shape index: {}]   ;;  %s1642_s1 = inlined_call_operand.vmem [shape: f32[8,4], index: 1, kind: input, shape index: {}]   ;;  %s1643_s2 = inlined_call_operand.vmem [shape: f32[8,1], index: 2, kind: input, shape index: {}]   ;;  %s1644_s3 = inlined_call_operand.vmem [shape: f32[16,8], index: 3, kind: input, shape index: {}]   ;;  %s1645_s4 = inlined_call_operand.vmem [shape: f32[16,1], index: 4, kind: input, shape index: {}]   ;;  %s1646_s5 = inlined_call_operand.vmem [shape: f32[16,72], index: 5, kind: input, shape index: {}]   ;;  %s1647_s6 = inlined_call_operand.vmem [shape: f32[16,1], index: 6, kind: input, shape index: {}]   ;;  %s1648_s7 = inlined_call_operand.hbm [shape: f32[2,32,256], index: 7, kind: output, shape index: {}]  }
   0x1   :  { %v76_v0 = vld [vmem:[%s1641_s0] sm:$0xff]  ;;  %v1064_v1 = vld [vmem:[%s1641_s0 + $0x8] sm:$0xff]  ;;  %157 = vmatprep.mubr.f32.mxu0 %v1145_v5  ;;  %696 = vmatprep.mubr.f32.mxu1 %v1145_v5 }
   0x2   :  { %v83_v3 = vcombine.high %v76_v0, %v76_v0  ;;  %v627_v4 = vcombine.high %v1064_v1, %v1064_v1 }
   0x3   :  { %12 = vsyncpa [#allocation3], 0  ;;  %v27_v6 = vld [vmem:[%s1642_s1] sm:$0xff]  ;;  %vm84_vm1 = vcmask 31744   ;;  %v1146_v7 = vmov 0   ;;  %v38_v8 = vand.u32 127, %v37_v2 }
   0x4   :  { %1089 = vset.pattern.permute.xlu0 %v1146_v7  ;;  %1120 = vset.pattern.permute.xlu1 %v1146_v7  ;;  %v28_v9 = vld [vmem:[%s1643_s2] sm:$0xff]  ;;  %s1147_s1 = smov 17   ;;  %s1148_s2 = smov 15   ;;  %vm288_vm6 = vcmask 924672   ;;  %vm300_vm7 = vcmask 1039360   ;;  %vm176_vm8 = vcmask 64512  }
   0x5   :  { %1057 = vmatprep.subr.msk.mxu0 %vm88_vm0, %v83_v3  ;;  %1065 = vmatprep.subr.msk.mxu1 %vm88_vm0, %v627_v4  ;;  %v39_v10 = vadd.s32 128, %v38_v8  ;;  %v44_v11 = vand.u32 15, %v38_v8  ;;  %s1149_s8 = smov 127   ;;  %s1150_s9 = smov 1   ;;  %v29_v59 = vld [vmem:[%s1644_s3] sm:$0xff]  ;;  %v30_v62 = vld [vmem:[%s1644_s3 + $0x8] sm:$0xff] }
   0x6   :  { %1058 = vmatpush1.msk.msra.mxu0 %vm88_vm0, %v76_v0  ;;  %1066 = vmatpush1.msk.msra.mxu1 %vm88_vm0, %v1064_v1  ;;  %s1151_s10 = smov 113   ;;  %s1152_s11 = smov 111   ;;  %vm336_vm9 = vcmask 138240   ;;  %vm324_vm10 = vcmask 121856   ;;  %vm312_vm11 = vcmask 7168   ;;  %vm414_vm12 = vcmask 777216  }
   0x7   :  { %1059 = vmatmul.mubr.msk.f32.vlgmr.msra.gmra.mxu0 %vm84_vm1, %v27_v6  ;;  %1067 = vmatmul.mubr.msk.f32.vlgmr.msra.gmra.mxu1 %vm84_vm1, %v27_v6  ;;  %v51_v12 = vand.u32 15, %v39_v10  ;;  %vm70_vm2 = vcmp.le.s32.totalorder %v44_v11, 14  ;;  %vm64_vm3 = vcmp.ge.s32.totalorder %v44_v11, 1  ;;  %s1153_s12 = smov 95   ;;  %s1154_s13 = smov 126   ;;  %vm274_vm13 = vcmask 908288  }
   0x8   :  { %79 = vperm.xlu0 %1089, %v28_v9   ;;  %247 = vmatprep.mubr.f32.mxu0 %v1145_v5  ;;  %v1055_v13 = vsel %vm70_vm2, 1.0, %v1145_v5  ;;  %v1053_v14 = vsel %vm64_vm3, 1.0, %v1145_v5  ;;  %s1155_s14 = smov 112   ;;  %s1156_s15 = smov 110   ;;  %vm376_vm14 = vcmask 916480   ;;  %vm364_vm15 = vcmask 1031168  }
   0x9   :  { %769 = vmatprep.mubr.f32.mxu1 %v1145_v5  ;;  %vm71_vm4 = vcmp.le.s32.totalorder %v51_v12, 14  ;;  %vm65_vm5 = vcmp.ge.s32.totalorder %v51_v12, 1  ;;  %s1157_s16 = smov 94   ;;  %s1158_s17 = smov 96   ;;  %vm426_vm0 = vcmask 769024   ;;  %vm405_vm1 = vcmask 785408  }
   0xa   :  { %v1056_v15 = vsel %vm71_vm4, 1.0, %v1145_v5  ;;  %v1054_v16 = vsel %vm65_vm5, 1.0, %v1145_v5  ;;  %vm393_vm2 = vcmask 900096   ;;  %vm532_vm3 = vcmask 588800  }
   0xb   :  { %v1090_v17 = vpack.i.bf16 %v1056_v15, %v1055_v13  ;;  %v1095_v18 = vpack.i.bf16 %v1054_v16, %v1053_v14 }
   0xd   :  { %1091 = vrot.lane.b32.xlu0 %v1090_v17, %s1147_s1  ;;  %1096 = vrot.lane.b32.xlu1 %v1095_v18, %s1148_s2 }
  0x11   :  { %1106 = vrot.lane.b32.xlu0 %v1095_v18, %s1149_s8  ;;  %1101 = vrot.lane.b32.xlu1 %v1090_v17, %s1150_s9 }
  0x15   :  { %1111 = vrot.lane.b32.xlu1 %v1090_v17, %s1151_s10  ;;  %1116 = vrot.lane.b32.xlu0 %v1095_v18, %s1152_s11 }
  0x19   :  { %412 = vrot.lane.b32.xlu1 %v1145_v5, %s1153_s12 }
  0x1d   :  { %347 = vrot.lane.b32.xlu1 %v1145_v5, %s1149_s8 }
  0x7f   :  { %v1233_v19 = vpop.permute.xlu1 %1096 }
  0x80   :  { %v1099_v34 = vunpack.i.h.bf16 %v1233_v19  ;;  %v1098_v52 = vunpack.i.l.bf16 %v1233_v19 }
  0x82   :  { %v331_v36 = vmul.f32 0.0, %v1099_v34  ;;  %v325_v6 = vsel %vm324_vm10, %v1098_v52, %v1099_v34 }
  0x83   :  { %v80_v20 = vpop.permute.xlu0 %79  ;;  %v1235_v21 = vpop.permute.xlu1 %1101 }
  0x84   :  { %v1104_v24 = vunpack.i.h.bf16 %v1235_v21  ;;  %v1103_v55 = vunpack.i.l.bf16 %v1235_v21 }
  0x86   :  { %v319_v32 = vmul.f32 0.0, %v1104_v24  ;;  %v313_v9 = vsel %vm312_vm11, %v1103_v55, %v1104_v24 }
  0x87   :  { %v1237_v22 = vpop.permute.xlu0 %1091  ;;  %v1112_v23 = vpop.permute.xlu1 %1111 }
  0x88   :  { %v1240_v25 = vunpack.i.h.bf16 %v1112_v23  ;;  %v1113_v26 = vunpack.i.l.bf16 %v1112_v23  ;;  %v1094_v30 = vunpack.i.h.bf16 %v1237_v22  ;;  %v1093_v49 = vunpack.i.l.bf16 %v1237_v22 }
  0x8a   :  { %v293_v28 = vmul.f32 0.0, %v1113_v26  ;;  %v1245_v29 = vsel %vm288_vm6, %v1113_v26, %v1240_v25  ;;  %v343_v35 = vmul.f32 0.0, %v1094_v30  ;;  %v337_v2 = vsel %vm336_vm9, %v1093_v49, %v1094_v30 }
  0x8b   :  { %v1242_v27 = vpop.permute.xlu0 %1106  ;;  %v1363_v16 = vpop.permute.xlu1 %412 }
  0x8c   :  { %v1108_v31 = vunpack.i.l.bf16 %v1242_v27  ;;  %358 = vrot.lane.b32.xlu1 %v293_v28, %s1154_s13  ;;  %v1109_v56 = vunpack.i.h.bf16 %v1242_v27 }
  0x8e   :  { %v305_v33 = vmul.f32 0.0, %v1108_v31  ;;  %v301_v60 = vsel %vm300_vm7, %v1108_v31, %v1109_v56 }
  0x8f   :  { %v1365_v17 = vpop.permute.xlu0 %1116  ;;  %v1369_v19 = vpop.permute.xlu1 %347 }
  0x90   :  { %370 = vrot.lane.b32.xlu0 %v305_v33, %s1155_s14  ;;  %391 = vrot.lane.b32.xlu1 %v319_v32, %s1156_s15 }
  0x94   :  { %424 = vrot.lane.b32.xlu0 %v343_v35, %s1157_s16 }
  0x98   :  { %403 = vrot.lane.b32.xlu0 %v331_v36, %s1158_s17 }
  0xc7   :  { %v159_v37 = vpop.f32.mrf.mxu0  ;;  %v698_v38 = vpop.f32.mrf.mxu1 }
  0xc8   :  { %v160_v39 = vadd.f32 %v159_v37, %v80_v20  ;;  %v699_v40 = vadd.f32 %v698_v38, %v80_v20 }
  0xc9   :  { %v161_v41 = vpop.f32.mrf.mxu0  ;;  %v700_v42 = vpop.f32.mrf.mxu1 }
  0xca   :  { %v1261_v43 = vmax.f32 %v160_v39, 0.0  ;;  %v1263_v44 = vmax.f32 %v699_v40, 0.0  ;;  %v162_v45 = vadd.f32 %v161_v41, %v80_v20  ;;  %v701_v46 = vadd.f32 %v700_v42, %v80_v20 }
  0xcc   :  { %v1265_v47 = vmax.f32 %v162_v45, 0.0  ;;  %v1267_v48 = vmax.f32 %v701_v46, 0.0  ;;  %848 = vrot.lane.b32.xlu0 %v1263_v44, %s1153_s12  ;;  %408 = vrot.lane.b32.xlu1 %v1261_v43, %s1153_s12  ;;  %v801_v50 = vmul.f32 %v1093_v49, %v1263_v44  ;;  %v341_v51 = vmul.f32 %v1093_v49, %v1261_v43 }
  0xcd   :  { %v799_v53 = vmul.f32 %v1098_v52, %v1263_v44  ;;  %v329_v54 = vmul.f32 %v1098_v52, %v1261_v43  ;;  %v797_v57 = vmul.f32 %v1103_v55, %v1263_v44  ;;  %v317_v58 = vmul.f32 %v1103_v55, %v1261_v43 }
  0xce   :  { %213 = vmatprep.subr.mxu0 %v1265_v47  ;;  %735 = vmatprep.subr.mxu1 %v1267_v48  ;;  %v306_v61 = vmul.f32 %v301_v60, %v1261_v43  ;;  %v795_v63 = vmul.f32 %v1263_v44, %v301_v60  ;;  %v294_v0 = vmul.f32 %v1245_v29, %v1261_v43 }
  0xcf   :  { %214 = vmatpush1.msra.mxu0 %v1261_v43  ;;  %736 = vmatpush1.msra.mxu1 %v1263_v44  ;;  %v793_v1 = vmul.f32 %v1263_v44, %v1245_v29  ;;  %v802_v3 = vmul.f32 %v1267_v48, %v337_v2  ;;  %v342_v4 = vmul.f32 %v337_v2, %v1265_v47 }
  0xd0   :  { %379 = vrot.lane.b32.xlu0 %v1261_v43, %s1152_s11  ;;  %349 = vrot.lane.b32.xlu1 %v1261_v43, %s1149_s8  ;;  %v800_v7 = vmul.f32 %v1267_v48, %v325_v6  ;;  %v330_v8 = vmul.f32 %v325_v6, %v1265_v47  ;;  %v318_v10 = vmul.f32 %v313_v9, %v1265_v47 }
  0xd1   :  { %1060 = vmatmul.mubr.msk.f32.vlgmr.msra.gmra.mxu0 %vm176_vm8, %v29_v59  ;;  %1068 = vmatmul.mubr.msk.f32.vlgmr.msra.gmra.mxu1 %vm176_vm8, %v29_v59  ;;  %v798_v11 = vmul.f32 %v1267_v48, %v313_v9  ;;  %v295_v12 = vmul.f32 %v1240_v25, %v1265_v47  ;;  %v307_v13 = vmul.f32 %v1109_v56, %v1265_v47 }
  0xd2   :  { %775 = vmatprep.mubr.f32.mxu1 %v1145_v5  ;;  %253 = vmatprep.mubr.f32.mxu0 %v1145_v5  ;;  %v794_v14 = vmul.f32 %v1240_v25, %v1267_v48  ;;  %v796_v15 = vmul.f32 %v1109_v56, %v1267_v48 }
  0xd4   :  { %827 = vrot.lane.b32.xlu0 %v1263_v44, %s1152_s11  ;;  %805 = vrot.lane.b32.xlu1 %v1263_v44, %s1149_s8 }
  0xd5   :  { %1061 = vmatmul.mubr.msk.f32.gmra.mxu0 %vm176_vm8, %v30_v62  ;;  %1069 = vmatmul.mubr.msk.f32.gmra.mxu1 %vm176_vm8, %v30_v62 }
  0xd6   :  { %603 = vmatprep.mubr.f32.mxu0 %v1145_v5  ;;  %1016 = vmatprep.mubr.f32.mxu1 %v1145_v5 }
  0xd8   :  { %856 = vrot.lane.b32.xlu1 %v801_v50, %s1157_s16  ;;  %420 = vrot.lane.b32.xlu0 %v341_v51, %s1157_s16 }
  0xdc   :  { %850 = vrot.lane.b32.xlu1 %v1267_v48, %s1153_s12  ;;  %410 = vrot.lane.b32.xlu0 %v1265_v47, %s1153_s12 }
  0xe0   :  { %842 = vrot.lane.b32.xlu1 %v799_v53, %s1158_s17  ;;  %399 = vrot.lane.b32.xlu0 %v329_v54, %s1158_s17 }
  0xe4   :  { %834 = vrot.lane.b32.xlu0 %v797_v57, %s1156_s15  ;;  %387 = vrot.lane.b32.xlu1 %v317_v58, %s1156_s15 }
  0xe8   :  { %381 = vrot.lane.b32.xlu1 %v1265_v47, %s1152_s11  ;;  %372 = vrot.lane.b32.xlu0 %v306_v61, %s1155_s14 }
  0xec   :  { %829 = vrot.lane.b32.xlu1 %v1267_v48, %s1152_s11  ;;  %821 = vrot.lane.b32.xlu0 %v795_v63, %s1155_s14 }
  0xf0   :  { %351 = vrot.lane.b32.xlu0 %v1265_v47, %s1149_s8  ;;  %360 = vrot.lane.b32.xlu1 %v294_v0, %s1154_s13 }
  0xf4   :  { %807 = vrot.lane.b32.xlu0 %v1267_v48, %s1149_s8  ;;  %813 = vrot.lane.b32.xlu1 %v793_v1, %s1154_s13 }
  0xf8   :  { %858 = vrot.lane.b32.xlu0 %v802_v3, %s1157_s16  ;;  %422 = vrot.lane.b32.xlu1 %v342_v4, %s1157_s16 }
  0xfc   :  { %844 = vrot.lane.b32.xlu0 %v800_v7, %s1158_s17  ;;  %401 = vrot.lane.b32.xlu1 %v330_v8, %s1158_s17 }
  0xfe   :  { %v1373_v21 = vpop.permute.xlu1 %358 }
 0x100   :  { %389 = vrot.lane.b32.xlu0 %v318_v10, %s1156_s15  ;;  %836 = vrot.lane.b32.xlu1 %v798_v11, %s1156_s15 }
 0x102   :  { %v1367_v18 = vpop.permute.xlu0 %370  ;;  %v1377_v23 = vpop.permute.xlu1 %391 }
 0x104   :  { %362 = vrot.lane.b32.xlu0 %v295_v12, %s1154_s13  ;;  %374 = vrot.lane.b32.xlu1 %v307_v13, %s1155_s14 }
 0x106   :  { %v1371_v20 = vpop.permute.xlu0 %424 }
 0x108   :  { %815 = vrot.lane.b32.xlu0 %v794_v14, %s1154_s13  ;;  %823 = vrot.lane.b32.xlu1 %v796_v15, %s1155_s14  ;;  %v1119_v14 = vunpack.i.h.bf16 %v1365_v17  ;;  %v1118_v15 = vunpack.i.l.bf16 %v1365_v17 }
 0x10a   :  { %v1375_v22 = vpop.permute.xlu0 %403 }
 0x13e   :  { %v849_v24 = vpop.permute.xlu0 %848  ;;  %v409_v25 = vpop.permute.xlu1 %408 }
 0x13f   :  { %484 = vrot.lane.b32.xlu0 %v409_v25, %s1147_s1  ;;  %904 = vrot.lane.b32.xlu1 %v849_v24, %s1147_s1 }
 0x142   :  { %v380_v26 = vpop.permute.xlu0 %379  ;;  %v350_v27 = vpop.permute.xlu1 %349 }
 0x143   :  { %466 = vrot.lane.b32.xlu0 %v380_v26, %s1147_s1  ;;  %v353_v30 = vsel %vm300_vm7, %v1369_v19, %v350_v27 }
 0x146   :  { %v828_v28 = vpop.permute.xlu0 %827  ;;  %v1382_v29 = vpop.permute.xlu1 %805 }
 0x147   :  { %448 = vrot.lane.b32.xlu0 %v353_v30, %s1147_s1  ;;  %886 = vrot.lane.b32.xlu1 %v828_v28, %s1147_s1 }
 0x14a   :  { %v1388_v31 = vpop.permute.xlu1 %856  ;;  %v421_v32 = vpop.permute.xlu0 %420 }
 0x14b   :  { %490 = vrot.lane.b32.xlu0 %v421_v32, %s1147_s1  ;;  %910 = vrot.lane.b32.xlu1 %v1388_v31, %s1147_s1 }
 0x14e   :  { %v851_v33 = vpop.permute.xlu1 %850  ;;  %v411_v34 = vpop.permute.xlu0 %410 }
 0x14f   :  { %v415_v41 = vsel %vm414_vm12, %v409_v25, %v411_v34  ;;  %v852_v46 = vsel %vm414_vm12, %v849_v24, %v851_v33  ;;  %v416_v57 = vsel %vm414_vm12, %v411_v34, %v1363_v16  ;;  %v853_v60 = vsel %vm414_vm12, %v851_v33, %v1363_v16 }
 0x150   :  { %v275_v25 = vsel %vm274_vm13, %v1118_v15, %v1119_v14  ;;  %v279_v34 = vmul.f32 0.0, %v1118_v15 }
 0x151   :  { %v280_v17 = vmul.f32 %v275_v25, %v1261_v43  ;;  %v791_v33 = vmul.f32 %v1263_v44, %v275_v25  ;;  %v31_v44 = vld [vmem:[%s1645_s4] sm:$0xff] }
 0x152   :  { %v1393_v35 = vpop.permute.xlu1 %842  ;;  %v1395_v36 = vpop.permute.xlu0 %399 }
 0x153   :  { %478 = vrot.lane.b32.xlu0 %v1395_v36, %s1147_s1  ;;  %898 = vrot.lane.b32.xlu1 %v1393_v35, %s1147_s1 }
 0x156   :  { %v1401_v37 = vpop.permute.xlu0 %834  ;;  %v1403_v38 = vpop.permute.xlu1 %387 }
 0x157   :  { %472 = vrot.lane.b32.xlu0 %v1403_v38, %s1147_s1  ;;  %892 = vrot.lane.b32.xlu1 %v1401_v37, %s1147_s1 }
 0x15a   :  { %v382_v39 = vpop.permute.xlu1 %381  ;;  %v1409_v40 = vpop.permute.xlu0 %372 }
 0x15b   :  { %486 = vrot.lane.b32.xlu0 %v415_v41, %s1147_s1  ;;  %470 = vrot.lane.b32.xlu1 %v382_v39, %s1147_s1  ;;  %v383_v51 = vsel %vm274_vm13, %v380_v26, %v382_v39  ;;  %v377_v56 = vsel %vm376_vm14, %v1367_v18, %v1409_v40 }
 0x15e   :  { %v830_v42 = vpop.permute.xlu1 %829  ;;  %v1414_v45 = vpop.permute.xlu0 %821 }
 0x15f   :  { %906 = vrot.lane.b32.xlu0 %v852_v46, %s1147_s1  ;;  %890 = vrot.lane.b32.xlu1 %v830_v42, %s1147_s1  ;;  %v831_v54 = vsel %vm274_vm13, %v828_v28, %v830_v42  ;;  %v825_v63 = vsel %vm376_vm14, %v1367_v18, %v1414_v45 }
 0x162   :  { %v352_v49 = vpop.permute.xlu0 %351  ;;  %v1419_v50 = vpop.permute.xlu1 %360 }
 0x163   :  { %468 = vrot.lane.b32.xlu0 %v383_v51, %s1147_s1  ;;  %452 = vrot.lane.b32.xlu1 %v352_v49, %s1147_s1  ;;  %v365_v61 = vsel %vm364_vm15, %v1373_v21, %v1419_v50  ;;  %v354_v0 = vsel %vm300_vm7, %v350_v27, %v352_v49 }
 0x166   :  { %v808_v52 = vpop.permute.xlu0 %807  ;;  %v1424_v53 = vpop.permute.xlu1 %813 }
 0x167   :  { %888 = vrot.lane.b32.xlu0 %v831_v54, %s1147_s1  ;;  %872 = vrot.lane.b32.xlu1 %v808_v52, %s1147_s1  ;;  %v810_v2 = vsel %vm300_vm7, %v1382_v29, %v808_v52  ;;  %v817_v3 = vsel %vm364_vm15, %v1373_v21, %v1424_v53 }
 0x16a   :  { %v423_v55 = vpop.permute.xlu1 %422  ;;  %v859_v58 = vpop.permute.xlu0 %858 }
 0x16b   :  { %460 = vrot.lane.b32.xlu0 %v377_v56, %s1147_s1  ;;  %488 = vrot.lane.b32.xlu1 %v416_v57, %s1147_s1  ;;  %v427_v7 = vsel %vm426_vm0, %v421_v32, %v423_v55  ;;  %v860_v9 = vsel %vm426_vm0, %v1388_v31, %v859_v58  ;;  %v428_v18 = vsel %vm426_vm0, %v423_v55, %v1371_v20 }
 0x16c   :  { %v861_v24 = vsel %vm426_vm0, %v859_v58, %v1371_v20  ;;  %v809_v31 = vsel %vm300_vm7, %v1369_v19, %v1382_v29  ;;  %v32_v19 = vld [vmem:[%s1645_s4 + $0x8] sm:$0xff] }
 0x16e   :  { %v402_v59 = vpop.permute.xlu1 %401  ;;  %v845_v1 = vpop.permute.xlu0 %844 }
 0x16f   :  { %908 = vrot.lane.b32.xlu1 %v853_v60, %s1147_s1  ;;  %454 = vrot.lane.b32.xlu0 %v365_v61, %s1147_s1  ;;  %v406_v11 = vsel %vm405_vm1, %v1395_v36, %v402_v59  ;;  %v846_v13 = vsel %vm405_vm1, %v1393_v35, %v845_v1  ;;  %v407_v26 = vsel %vm405_vm1, %v402_v59, %v1375_v22 }
 0x170   :  { %v847_v27 = vsel %vm405_vm1, %v845_v1, %v1375_v22  ;;  %v792_v35 = vmul.f32 %v1119_v14, %v1267_v48  ;;  %v35_v48 = vld [vmem:[%s1647_s6] sm:$0xff] }
 0x172   :  { %v837_v62 = vpop.permute.xlu1 %836  ;;  %v390_v6 = vpop.permute.xlu0 %389 }
 0x173   :  { %880 = vrot.lane.b32.xlu1 %v825_v63, %s1147_s1  ;;  %450 = vrot.lane.b32.xlu0 %v354_v0, %s1147_s1  ;;  %v394_v16 = vsel %vm393_vm2, %v1403_v38, %v390_v6  ;;  %v838_v21 = vsel %vm393_vm2, %v1401_v37, %v837_v62  ;;  %v395_v43 = vsel %vm393_vm2, %v390_v6, %v1377_v23 }
 0x174   :  { %v839_v22 = vsel %vm393_vm2, %v837_v62, %v1377_v23  ;;  %v281_v23 = vmul.f32 %v1119_v14, %v1265_v47  ;;  %v36_v47 = vld [vmem:[%s1647_s6 + $0x8] sm:$0xff] }
 0x176   :  { %v375_v4 = vpop.permute.xlu1 %374  ;;  %v363_v10 = vpop.permute.xlu0 %362 }
 0x177   :  { %870 = vrot.lane.b32.xlu0 %v810_v2, %s1147_s1  ;;  %874 = vrot.lane.b32.xlu1 %v817_v3, %s1147_s1  ;;  %v378_v20 = vsel %vm376_vm14, %v1409_v40, %v375_v4  ;;  %v366_v30 = vsel %vm364_vm15, %v1419_v50, %v363_v10 }
 0x17a   :  { %v824_v8 = vpop.permute.xlu1 %823  ;;  %v816_v12 = vpop.permute.xlu0 %815 }
 0x17b   :  { %492 = vrot.lane.b32.xlu0 %v427_v7, %s1147_s1  ;;  %464 = vrot.lane.b32.xlu1 %v375_v4, %s1147_s1  ;;  %v826_v28 = vsel %vm376_vm14, %v1414_v45, %v824_v8  ;;  %v818_v32 = vsel %vm364_vm15, %v1424_v53, %v816_v12 }
 0x17f   :  { %912 = vrot.lane.b32.xlu0 %v860_v9, %s1147_s1  ;;  %884 = vrot.lane.b32.xlu1 %v824_v8, %s1147_s1 }
 0x183   :  { %480 = vrot.lane.b32.xlu0 %v406_v11, %s1147_s1  ;;  %458 = vrot.lane.b32.xlu1 %v363_v10, %s1147_s1 }
 0x187   :  { %900 = vrot.lane.b32.xlu0 %v846_v13, %s1147_s1  ;;  %878 = vrot.lane.b32.xlu1 %v816_v12, %s1147_s1 }
 0x18b   :  { %474 = vrot.lane.b32.xlu0 %v394_v16, %s1147_s1  ;;  %494 = vrot.lane.b32.xlu1 %v428_v18, %s1147_s1 }
 0x18f   :  { %894 = vrot.lane.b32.xlu0 %v838_v21, %s1147_s1  ;;  %914 = vrot.lane.b32.xlu1 %v861_v24, %s1147_s1 }
 0x193   :  { %482 = vrot.lane.b32.xlu1 %v407_v26, %s1147_s1  ;;  %444 = vrot.lane.b32.xlu0 %v280_v17, %s1147_s1 }
 0x197   :  { %902 = vrot.lane.b32.xlu1 %v847_v27, %s1147_s1  ;;  %462 = vrot.lane.b32.xlu0 %v378_v20, %s1147_s1 }
 0x19b   :  { %476 = vrot.lane.b32.xlu1 %v395_v43, %s1147_s1  ;;  %882 = vrot.lane.b32.xlu0 %v826_v28, %s1147_s1 }
 0x19f   :  { %896 = vrot.lane.b32.xlu1 %v839_v22, %s1147_s1  ;;  %456 = vrot.lane.b32.xlu0 %v366_v30, %s1147_s1 }
 0x1a3   :  { %868 = vrot.lane.b32.xlu1 %v809_v31, %s1147_s1  ;;  %876 = vrot.lane.b32.xlu0 %v818_v32, %s1147_s1 }
 0x1a7   :  { %446 = vrot.lane.b32.xlu1 %v281_v23, %s1147_s1  ;;  %864 = vrot.lane.b32.xlu0 %v791_v33, %s1147_s1 }
 0x1ab   :  { %866 = vrot.lane.b32.xlu1 %v792_v35, %s1147_s1  ;;  %442 = vrot.lane.b32.xlu0 %v279_v34, %s1147_s1 }
 0x1af   :  { %173 = vperm.xlu0 %1089, %v32_v19   ;;  %168 = vperm.xlu1 %1120, %v31_v44  }
 0x1b1   :  { %v485_v29 = vpop.permute.xlu0 %484  ;;  %v905_v37 = vpop.permute.xlu1 %904 }
 0x1b3   :  { %436 = vperm.xlu0 %1089, %v36_v47   ;;  %431 = vperm.xlu1 %1120, %v35_v48  }
 0x1b5   :  { %v1535_v36 = vpop.permute.xlu0 %466 }
 0x1b9   :  { %v1537_v38 = vpop.permute.xlu0 %448  ;;  %v1539_v39 = vpop.permute.xlu1 %886 }
 0x1bd   :  { %v491_v40 = vpop.permute.xlu0 %490  ;;  %v911_v41 = vpop.permute.xlu1 %910 }
 0x1c5   :  { %v479_v42 = vpop.permute.xlu0 %478  ;;  %v899_v45 = vpop.permute.xlu1 %898 }
 0x1c9   :  { %v473_v46 = vpop.permute.xlu0 %472  ;;  %v1541_v49 = vpop.permute.xlu1 %892 }
 0x1cd   :  { %v487_v50 = vpop.permute.xlu0 %486  ;;  %v471_v51 = vpop.permute.xlu1 %470 }
 0x1ce   :  { %v510_v16 = vsel %vm336_vm9, %v485_v29, %v487_v50 }
 0x1d1   :  { %v907_v52 = vpop.permute.xlu0 %906  ;;  %v1543_v53 = vpop.permute.xlu1 %890 }
 0x1d2   :  { %v930_v26 = vsel %vm336_vm9, %v905_v37, %v907_v52 }
 0x1d5   :  { %v469_v54 = vpop.permute.xlu0 %468  ;;  %v1545_v55 = vpop.permute.xlu1 %452 }
 0x1d6   :  { %v505_v19 = vsel %vm336_vm9, %v469_v54, %v471_v51  ;;  %v504_v44 = vsel %vm336_vm9, %v1535_v36, %v469_v54 }
 0x1d9   :  { %v1547_v56 = vpop.permute.xlu0 %888  ;;  %v1549_v57 = vpop.permute.xlu1 %872 }
 0x1da   :  { %v925_v36 = vsel %vm336_vm9, %v1547_v56, %v1543_v53 }
 0x1dd   :  { %v1551_v58 = vpop.permute.xlu0 %460  ;;  %v489_v59 = vpop.permute.xlu1 %488 }
 0x1de   :  { %v511_v15 = vsel %vm336_vm9, %v487_v50, %v489_v59 }
 0x1e1   :  { %v1553_v60 = vpop.permute.xlu0 %454  ;;  %v909_v61 = vpop.permute.xlu1 %908 }
 0x1e2   :  { %v931_v17 = vsel %vm336_vm9, %v907_v52, %v909_v61  ;;  %v249_v61 = vpop.f32.mrf.mxu0 }
 0x1e5   :  { %v1555_v62 = vpop.permute.xlu0 %450  ;;  %v1557_v63 = vpop.permute.xlu1 %880 }
 0x1e6   :  { %v499_v51 = vsel %vm336_vm9, %v1555_v62, %v1545_v55 }
 0x1e9   :  { %v1559_v0 = vpop.permute.xlu0 %870  ;;  %v1561_v1 = vpop.permute.xlu1 %874 }
 0x1ea   :  { %v919_v59 = vsel %vm336_vm9, %v1559_v0, %v1549_v57 }
 0x1ed   :  { %v493_v2 = vpop.permute.xlu0 %492  ;;  %v465_v3 = vpop.permute.xlu1 %464 }
 0x1ee   :  { %v512_v14 = vsel %vm336_vm9, %v491_v40, %v493_v2 }
 0x1f1   :  { %v913_v4 = vpop.permute.xlu0 %912  ;;  %v1563_v6 = vpop.permute.xlu1 %884 }
 0x1f2   :  { %v932_v25 = vsel %vm336_vm9, %v911_v41, %v913_v4 }
 0x1f5   :  { %v481_v7 = vpop.permute.xlu0 %480  ;;  %v459_v8 = vpop.permute.xlu1 %458 }
 0x1f6   :  { %v508_v28 = vsel %vm336_vm9, %v479_v42, %v481_v7 }
 0x1f9   :  { %v901_v9 = vpop.permute.xlu0 %900  ;;  %v1565_v10 = vpop.permute.xlu1 %878 }
 0x1fa   :  { %v928_v32 = vsel %vm336_vm9, %v899_v45, %v901_v9  ;;  %v924_v45 = vsel %vm336_vm9, %v1539_v39, %v1547_v56  ;;  %v498_v39 = vsel %vm336_vm9, %v1537_v38, %v1555_v62  ;;  %v771_v62 = vpop.f32.mrf.mxu1 }
 0x1fd   :  { %v475_v11 = vpop.permute.xlu0 %474  ;;  %v495_v12 = vpop.permute.xlu1 %494 }
 0x1fe   :  { %v513_v13 = vsel %vm336_vm9, %v493_v2, %v495_v12  ;;  %v506_v35 = vsel %vm336_vm9, %v473_v46, %v475_v11  ;;  %v33_v2 = vld [vmem:[%s1646_s5] sm:$0xff] }
 0x1ff   :  { %553 = vmatprep.subr.mxu0 %v513_v13 }
 0x200   :  { %554 = vmatpush1.msra.mxu0 %v512_v14 }
 0x201   :  { %v895_v18 = vpop.permute.xlu0 %894  ;;  %v915_v21 = vpop.permute.xlu1 %914  ;;  %555 = vmatprep.subr.mxu0 %v511_v15 }
 0x202   :  { %556 = vmatpush1.msra.mxu0 %v510_v16  ;;  %v933_v24 = vsel %vm336_vm9, %v913_v4, %v915_v21  ;;  %v926_v40 = vsel %vm336_vm9, %v1541_v49, %v895_v18 }
 0x203   :  { %966 = vmatprep.subr.mxu1 %v933_v24 }
 0x204   :  { %967 = vmatpush1.msra.mxu1 %v932_v25 }
 0x205   :  { %968 = vmatprep.subr.mxu1 %v931_v17  ;;  %v483_v27 = vpop.permute.xlu1 %482  ;;  %v1575_v20 = vpop.permute.xlu0 %444 }
 0x206   :  { %969 = vmatpush1.msra.mxu1 %v930_v26  ;;  %v509_v43 = vsel %vm336_vm9, %v481_v7, %v483_v27  ;;  %v34_v7 = vld [vmem:[%s1646_s5 + $0x8] sm:$0xff]  ;;  %s1159_s5 = smov [#allocation2]  }
 0x207   :  { %557 = vmatprep.subr.mxu0 %v509_v43  ;;  %s1042_s30 = sshll.u32 %s1159_s5, 4  ;;  %s1043_s30 = int_to_ptr.vmem [resolvable:$true] %s1042_s30 }
 0x208   :  { %558 = vmatpush1.msra.mxu0 %v508_v28  ;;  %s1123_s1 = scalar_lea.vmem %s1043_s30, 2048  ;;  %p1128_p1 = scmp.lt.s32.totalorder %s1043_s30, %s1043_s30 }
 0x209   :  { %v903_v22 = vpop.permute.xlu1 %902  ;;  %v463_v30 = vpop.permute.xlu0 %462  ;;  %p1124_p0 = scmp.ne.s32.totalorder %s1043_s30, %s1123_s1  ;;  %p1129_p2 = scmp.lt.s32.totalorder %s1123_s1, %s1123_s1 }
 0x20a   :  { %v929_v31 = vsel %vm336_vm9, %v901_v9, %v903_v22  ;;  %v503_v48 = vsel %vm336_vm9, %v463_v30, %v465_v3  ;;  %v502_v41 = vsel %vm336_vm9, %v1551_v58, %v463_v30 }
 0x20b   :  { %970 = vmatprep.subr.mxu1 %v929_v31  ;;  %p1130_p3 = por %p1129_p2, %p1128_p1 }
 0x20c   :  { %971 = vmatpush1.msra.mxu1 %v928_v32 }
 0x20d   :  { %v477_v23 = vpop.permute.xlu1 %476  ;;  %v883_v33 = vpop.permute.xlu0 %882  ;;  %p1131_p4 = pnand %p1130_p3, %p1124_p0 }
 0x20e   :  { %v507_v34 = vsel %vm336_vm9, %v475_v11, %v477_v23  ;;  %v923_v52 = vsel %vm336_vm9, %v883_v33, %v1563_v6  ;;  %v922_v53 = vsel %vm336_vm9, %v1557_v63, %v883_v33  ;;  %v773_v6 = vpop.f32.mrf.mxu1 }
 0x20f   :  { %559 = vmatprep.subr.mxu0 %v507_v34 }
 0x210   :  { %560 = vmatpush1.msra.mxu0 %v506_v35  ;;  %v777_v9 = vpop.f32.mrf.mxu1 }
 0x211   :  { %v897_v47 = vpop.permute.xlu1 %896  ;;  %v457_v29 = vpop.permute.xlu0 %456  ;;  %561 = vmatprep.subr.mxu0 %v505_v19 }
 0x212   :  { %562 = vmatpush1.msra.mxu0 %v504_v44  ;;  %v927_v37 = vsel %vm336_vm9, %v895_v18, %v897_v47  ;;  %v501_v42 = vsel %vm336_vm9, %v457_v29, %v459_v8  ;;  %v500_v46 = vsel %vm336_vm9, %v1553_v60, %v457_v29 }
 0x213   :  { %563 = vmatprep.subr.mxu0 %v503_v48  ;;  %972 = vmatprep.subr.mxu1 %v927_v37 }
 0x214   :  { %564 = vmatpush1.msra.mxu0 %v502_v41  ;;  %973 = vmatpush1.msra.mxu1 %v926_v40 }
 0x215   :  { %974 = vmatprep.subr.mxu1 %v925_v36  ;;  %v869_v49 = vpop.permute.xlu1 %868  ;;  %v877_v50 = vpop.permute.xlu0 %876  ;;  %565 = vmatprep.subr.mxu0 %v501_v42 }
 0x216   :  { %566 = vmatpush1.msra.mxu0 %v500_v46  ;;  %975 = vmatpush1.msra.mxu1 %v924_v45  ;;  %v921_v54 = vsel %vm336_vm9, %v877_v50, %v1565_v10  ;;  %v920_v55 = vsel %vm336_vm9, %v1561_v1, %v877_v50  ;;  %v918_v60 = vsel %vm336_vm9, %v869_v49, %v1559_v0  ;;  %v251_v0 = vpop.f32.mrf.mxu0  ;;  %v779_v10 = vpop.f32.mrf.mxu1 }
 0x217   :  { %567 = vmatprep.subr.mxu0 %v499_v51  ;;  %976 = vmatprep.subr.mxu1 %v923_v52 }
 0x218   :  { %568 = vmatpush1.msra.mxu0 %v498_v39  ;;  %977 = vmatpush1.msra.mxu1 %v922_v53  ;;  %v255_v8 = vpop.f32.mrf.mxu0 }
 0x219   :  { %v447_v56 = vpop.permute.xlu1 %446  ;;  %978 = vmatprep.subr.mxu1 %v921_v54  ;;  %v865_v58 = vpop.permute.xlu0 %864 }
 0x21a   :  { %979 = vmatpush1.msra.mxu1 %v920_v55  ;;  %v497_v38 = vsel %vm336_vm9, %v1575_v20, %v447_v56  ;;  %v257_v11 = vpop.f32.mrf.mxu0 }
 0x21b   :  { %569 = vmatprep.subr.mxu0 %v497_v38  ;;  %980 = vmatprep.subr.mxu1 %v919_v59 }
 0x21c   :  { %981 = vmatpush1.msra.mxu1 %v918_v60 }
 0x21d   :  { %v867_v63 = vpop.permute.xlu1 %866  ;;  %v443_v1 = vpop.permute.xlu0 %442 }
 0x21e   :  { %v496_v3 = vsel %vm336_vm9, %v443_v1, %v1575_v20  ;;  %v916_v57 = vsel %vm336_vm9, %v443_v1, %v865_v58  ;;  %v917_v4 = vsel %vm336_vm9, %v865_v58, %v867_v63 }
 0x21f   :  { %570 = vmatpush1.msra.mxu0 %v496_v3  ;;  %982 = vmatprep.subr.mxu1 %v917_v4 }
 0x220   :  { %1062 = vmatmul.mubr.msk.f32.vlgmr.msra.gmra.mxu0 %vm532_vm3, %v33_v2  ;;  %983 = vmatpush1.msra.mxu1 %v916_v57 }
 0x221   :  { %1070 = vmatmul.mubr.msk.f32.vlgmr.msra.gmra.mxu1 %vm532_vm3, %v33_v2  ;;  %609 = vmatprep.mubr.f32.mxu0 %v1145_v5 }
 0x222   :  { %1022 = vmatprep.mubr.f32.mxu1 %v1145_v5 }
 0x224   :  { %1063 = vmatmul.mubr.msk.f32.gmra.mxu0 %vm532_vm3, %v34_v7 }
 0x225   :  { %1071 = vmatmul.mubr.msk.f32.gmra.mxu1 %vm532_vm3, %v34_v7 }
 0x22a   :  { %v174_v12 = vpop.permute.xlu0 %173  ;;  %v169_v18 = vpop.permute.xlu1 %168 }
 0x22b   :  { %v256_v13 = vadd.f32 %v255_v8, %v174_v12  ;;  %v778_v14 = vadd.f32 %v777_v9, %v174_v12  ;;  %v780_v15 = vadd.f32 %v779_v10, %v174_v12  ;;  %v258_v16 = vadd.f32 %v257_v11, %v174_v12 }
 0x22c   :  { %v250_v21 = vadd.f32 %v249_v61, %v169_v18  ;;  %v252_v24 = vadd.f32 %v251_v0, %v169_v18  ;;  %v772_v25 = vadd.f32 %v771_v62, %v169_v18  ;;  %v774_v17 = vadd.f32 %v773_v6, %v169_v18 }
 0x22d   :  { %v262_v26 = vmax.f32 %v256_v13, 0.0  ;;  %v784_v5 = vmax.f32 %v778_v14, 0.0  ;;  %v785_v27 = vmax.f32 %v780_v15, 0.0  ;;  %v263_v20 = vmax.f32 %v258_v16, 0.0 }
 0x22e   :  { %v260_v43 = vmax.f32 %v250_v21, 0.0  ;;  %v261_v28 = vmax.f32 %v252_v24, 0.0  ;;  %v782_v22 = vmax.f32 %v772_v25, 0.0  ;;  %v783_v30 = vmax.f32 %v774_v17, 0.0  ;;  %v432_v31 = vpop.permute.xlu1 %431  ;;  %v437_v29 = vpop.permute.xlu0 %436 }
 0x22f   :  { %266 = vst [vmem:[#allocation2 + $0x10] sm:$0xff] %v262_v26  ;;  %789 = vst [vmem:[#allocation2 + $0x50] sm:$0xff] %v784_v5 }
 0x230   :  { %790 = vst [vmem:[#allocation2 + $0x58] sm:$0xff] %v785_v27  ;;  %267 = vst [vmem:[#allocation2 + $0x18] sm:$0xff] %v263_v20 }
 0x231   :  { %264 = vst [vmem:[#allocation2] sm:$0xff] %v260_v43  ;;  %265 = vst [vmem:[#allocation2 + $0x8] sm:$0xff] %v261_v28 }
 0x232   :  { %787 = vst [vmem:[#allocation2 + $0x40] sm:$0xff] %v782_v22  ;;  %788 = vst [vmem:[#allocation2 + $0x48] sm:$0xff] %v783_v30 }
 0x2e0   :  { %v605_v32 = vpop.f32.mrf.mxu0 }
 0x2e1   :  { %v606_v23 = vadd.f32 %v605_v32, %v432_v31  ;;  %v1018_v33 = vpop.f32.mrf.mxu1 }
 0x2e2   :  { %v1019_v34 = vadd.f32 %v1018_v33, %v432_v31  ;;  %v607_v35 = vpop.f32.mrf.mxu0 }
 0x2e3   :  { %v616_v19 = vmax.f32 %v606_v23, 0.0  ;;  %v608_v44 = vadd.f32 %v607_v35, %v432_v31  ;;  %v1020_v47 = vpop.f32.mrf.mxu1 }
 0x2e4   :  { %v1029_v48 = vmax.f32 %v1019_v34, 0.0  ;;  %v1021_v37 = vadd.f32 %v1020_v47, %v432_v31  ;;  %v611_v40 = vpop.f32.mrf.mxu0 }
 0x2e5   :  { %620 = vst [vmem:[#allocation2 + $0x20] sm:$0xff] %v616_v19  ;;  %v617_v41 = vmax.f32 %v608_v44, 0.0  ;;  %v612_v36 = vadd.f32 %v611_v40, %v437_v29  ;;  %v1024_v42 = vpop.f32.mrf.mxu1 }
 0x2e6   :  { %1033 = vst [vmem:[#allocation2 + $0x60] sm:$0xff] %v1029_v48  ;;  %v1030_v45 = vmax.f32 %v1021_v37, 0.0  ;;  %v1025_v46 = vadd.f32 %v1024_v42, %v437_v29  ;;  %v613_v49 = vpop.f32.mrf.mxu0 }
 0x2e7   :  { %621 = vst [vmem:[#allocation2 + $0x28] sm:$0xff] %v617_v41  ;;  %v618_v50 = vmax.f32 %v612_v36, 0.0  ;;  %v614_v51 = vadd.f32 %v613_v49, %v437_v29  ;;  %v1026_v52 = vpop.f32.mrf.mxu1 }
 0x2e8   :  { %1034 = vst [vmem:[#allocation2 + $0x68] sm:$0xff] %v1030_v45  ;;  %v1031_v39 = vmax.f32 %v1025_v46, 0.0  ;;  %v1027_v53 = vadd.f32 %v1026_v52, %v437_v29 }
 0x2e9   :  { %622 = vst [vmem:[#allocation2 + $0x30] sm:$0xff] %v618_v50  ;;  %v619_v54 = vmax.f32 %v614_v51, 0.0 }
 0x2ea   :  { %1035 = vst [vmem:[#allocation2 + $0x70] sm:$0xff] %v1031_v39  ;;  %v1032_v55 = vmax.f32 %v1027_v53, 0.0 }
 0x2eb   :  { %623 = vst [vmem:[#allocation2 + $0x38] sm:$0xff] %v619_v54 }
 0x2ec   :  { %1036 = vst [vmem:[#allocation2 + $0x78] sm:$0xff] %v1032_v55 }
 0x2ed   :  { %1134 = shalt.err (!%p1131_p4)
}
 0x2ee   :  { %s1160_s2 = smov 256   ;;  %s1161_s8 = smov 16  }
 0x2ef   :  { %1048 = dma.vmem_to_hbm [thread:$0]  %s1043_s30, 2048, %s1648_s7, [#allocation3], %s1160_s2, %s1160_s2, %s1161_s8  }
 0x2f0   :  { %1143 = dma.done.wait [#allocation3], 2048  }
 0x2f1   :  { %1144 = vsyncadd [#allocation3], 4294965248 }
 0x2f2   :  { %1052 = vsyncpa [#allocation3], 1 }

</bundles_post_ra>
